<compile_context>
chip_gen: v6e
topology: v6e:2x2x1
jax: 0.10.0
libtpu: 0.0.40
codegen_flags: <defaults>
</compile_context>

<pallas_src>
import functools

import jax
import jax.numpy as jnp
from jax import lax
from jax.experimental import pallas as pl
from jax.experimental.pallas import tpu as pltpu


def _label_smoothing_xent_kernel(x_ref, t_ref, o_ref, *, confidence, smoothing):
    """One (tn, C) row tile -> (1, tn) lane-dense per-row losses (f32)."""
    x = x_ref[...].astype(jnp.float32)          # (tn, C) f32, upcast in-kernel only
    tgt = t_ref[...]                            # (tn, 1) int32
    tn, c = x.shape

    # Numerically stable row-wise logsumexp.
    m = jnp.max(x, axis=-1, keepdims=True)                           # (tn, 1)
    lse = jnp.log(jnp.sum(jnp.exp(x - m), axis=-1, keepdims=True))   # (tn, 1)

    # Gather-free x[i, target[i]] via a lane-iota select + reduce; no (tn, C)
    # weight / product temporaries are materialized.
    # NOTE: a target outside [0, C) silently selects 0.0 (PyTorch would raise).
    classes = lax.broadcasted_iota(jnp.int32, (tn, c), 1)
    x_t = jnp.sum(jnp.where(classes == tgt, x, 0.0),
                  axis=-1, keepdims=True)                            # (tn, 1)
    x_mean = jnp.sum(x, axis=-1, keepdims=True) * (1.0 / c)          # (tn, 1)

    # loss_i = conf*(m+lse-x_t) + smooth*(m+lse-mean(x))
    loss_col = (m + lse) - (confidence * x_t + smoothing * x_mean)   # (tn, 1)

    # Lane-dense epilogue: relayout the (tn, 1) column into (1, tn) rows in
    # 128-row chunks (diag-select + sublane reduce).  Iotas are hoisted and
    # per-chunk intermediates are (128,128) = 16 vregs, so no spills at large
    # tn.  where-select isolates any NaN/garbage in padded rows to their own
    # output lane, which the wrapper slices off.
    chunk = min(tn, 128)
    rows = lax.broadcasted_iota(jnp.int32, (chunk, chunk), 0)
    cols = lax.broadcasted_iota(jnp.int32, (chunk, chunk), 1)
    diag = rows == cols
    for j in range(tn // chunk):
        col = loss_col[j * chunk:(j + 1) * chunk, :]                 # (chunk, 1)
        row = jnp.sum(jnp.where(diag, col, 0.0), axis=0, keepdims=True)
        o_ref[:, j * chunk:(j + 1) * chunk] = row.astype(o_ref.dtype)


def _vmem_limit_bytes():
    # v5e/v6e: 128 MiB physical -> ~96-100 MiB usable; v7x: 64 MiB -> ~48 MiB.
    try:
        phys = int(pltpu.get_tpu_info().vmem_capacity_bytes)
    except Exception:  # conservative default = v7x per-core size
        phys = 64 * 1024 * 1024
    return min((phys * 3) // 4, 100 * 1024 * 1024)


def _pick_row_tile(n, c, x_itemsize, vmem_limit):
    # Per-row VMEM cost: double-buffered input tile (2 * itemsize * C) plus
    # in-kernel f32 temporaries (upcast / exp / select ~ 3 * 4 bytes * C).
    per_row = c * (2 * x_itemsize + 3 * 4)
    budget = (vmem_limit * 3) // 5          # headroom for output/targets/relayout
    tn = budget // max(per_row, 1)
    tn = max(128, min(4096, (tn // 128) * 128))
    # Keep at least 2 grid steps when the batch allows it (v7x megacore: 2 TCs;
    # harmless on v5e/v6e).
    if n >= 256:
        half = (((n + 1) // 2) + 127) // 128 * 128
        tn = min(tn, half)
    return tn


def _logits_in_spec(tn, c, tile_bytes, n_tiles):
    idx = lambda i: (i, 0)
    # Tiny per-step DMAs leave issue latency exposed under the default 2-deep
    # buffer; use 3 buffers in that regime (negligible VMEM cost).
    if n_tiles >= 3 and tile_bytes < 256 * 1024 and hasattr(pl, "Buffered"):
        try:
            return pl.BlockSpec((tn, c), idx, pipeline_mode=pl.Buffered(3))
        except TypeError:
            pass
    return pl.BlockSpec((tn, c), idx)


def label_smoothing_cross_entropy(x, target, *, smoothing=0.1,
                                  reduction="mean", row_tile=None):
    """Pallas equivalent of timm LabelSmoothingCrossEntropy.forward."""
    assert x.ndim == 2 and target.ndim == 1 and target.shape[0] == x.shape[0]
    assert smoothing < 1.0
    n, c = x.shape
    confidence = 1.0 - smoothing

    vmem_limit = _vmem_limit_bytes()
    tn = row_tile if row_tile is not None else _pick_row_tile(
        n, c, x.dtype.itemsize, vmem_limit)
    if tn >= n:
        tn, n_tiles = n, 1
    else:
        assert tn % 128 == 0, "row_tile must be a multiple of 128 when tiling"
        n_tiles = pl.cdiv(n, tn)

    tgt2d = target.astype(jnp.int32).reshape(n, 1)
    kernel = functools.partial(_label_smoothing_xent_kernel,
                               confidence=confidence, smoothing=smoothing)
    tile_bytes = tn * c * x.dtype.itemsize

    out = pl.pallas_call(
        kernel,
        out_shape=jax.ShapeDtypeStruct((1, n_tiles * tn), jnp.float32),
        grid_spec=pltpu.PrefetchScalarGridSpec(
            num_scalar_prefetch=0,
            grid=(n_tiles,),
            in_specs=[
                _logits_in_spec(tn, c, tile_bytes, n_tiles),   # logits row tile
                pl.BlockSpec((tn, 1), lambda i: (i, 0)),       # target row tile
            ],
            out_specs=pl.BlockSpec((1, tn), lambda i: (0, i)),  # lane-dense
        ),
        compiler_params=pltpu.CompilerParams(
            dimension_semantics=("parallel",),   # shards batch tiles over TCs
            vmem_limit_bytes=vmem_limit,
        ),
        cost_estimate=pl.CostEstimate(
            flops=6 * n * c,
            transcendentals=n * c,
            bytes_accessed=n * c * x.dtype.itemsize + n * 4 + n_tiles * tn * 4,
        ),
    )(x, tgt2d)

    loss = out[0, :n]                            # (N,) float32 per-sample loss
    if reduction == "mean":
        return jnp.mean(loss)
    if reduction == "none":
        return loss
    raise ValueError(f"unsupported reduction: {reduction!r}")


if __name__ == "__main__":
    key = jax.random.PRNGKey(0)
    kx, kt, kx2, kt2, kx3, kt3 = jax.random.split(key, 6)

    def reference(x, target, smoothing=0.1, reduction="mean"):
        logprobs = jax.nn.log_softmax(x.astype(jnp.float32), axis=-1)
        nll = -jnp.take_along_axis(
            logprobs, target[:, None].astype(jnp.int32), axis=-1)[:, 0]
        smooth = -jnp.mean(logprobs, axis=-1)
        loss = (1.0 - smoothing) * nll + smoothing * smooth
        return jnp.mean(loss) if reduction == "mean" else loss

    # Case 1: small single-tile batch, module defaults (smoothing=0.1, 'mean').
    N, C = 8, 32
    x = jax.random.normal(kx, (N, C), dtype=jnp.float32)
    t = jax.random.randint(kt, (N,), 0, C)
    out_mean = label_smoothing_cross_entropy(x, t)
    out_none = label_smoothing_cross_entropy(x, t, reduction="none")
    jax.block_until_ready((out_mean, out_none))
    assert out_none.shape == (N,) and out_none.dtype == jnp.float32
    assert jnp.allclose(out_mean, reference(x, t), atol=1e-5, rtol=1e-5)
    assert jnp.allclose(out_none, reference(x, t, reduction="none"),
                        atol=1e-5, rtol=1e-5)

    # Case 2: explicit multi-tile grid with a ragged tail (400 % 128 != 0),
    # bf16 logits (f32 math inside the kernel only), small per-step DMAs so
    # the 3-deep buffering path is exercised.
    N2, C2 = 400, 48
    x2 = jax.random.normal(kx2, (N2, C2), dtype=jnp.float32).astype(jnp.bfloat16)
    t2 = jax.random.randint(kt2, (N2,), 0, C2)
    out2 = label_smoothing_cross_entropy(x2, t2, smoothing=0.2,
                                         reduction="none", row_tile=128)
    jax.block_until_ready(out2)
    assert out2.shape == (N2,)
    assert jnp.allclose(out2,
                        reference(x2, t2, smoothing=0.2, reduction="none"),
                        atol=1e-4, rtol=1e-4)

    # Case 3: auto tile selection with the >=2-grid-step split (N >= 256).
    N3, C3 = 384, 40
    x3 = jax.random.normal(kx3, (N3, C3), dtype=jnp.float32)
    t3 = jax.random.randint(kt3, (N3,), 0, C3)
    out3 = label_smoothing_cross_entropy(x3, t3)
    jax.block_until_ready(out3)
    assert jnp.allclose(out3, reference(x3, t3), atol=1e-5, rtol=1e-5)

    print("KERNEL_OK")
</pallas_src>

<mosaic_0001>
module attributes {stable_mosaic.version = 11 : i64} {
  func.func @_label_smoothing_xent_kernel(%arg0: i32, %arg1: memref<8x32xf32, #tpu.memory_space<vmem>>, %arg2: memref<8x1xi32, #tpu.memory_space<vmem>>, %arg3: memref<1x8xf32, #tpu.memory_space<vmem>>) attributes {dimension_semantics = [#tpu.dimension_semantics<parallel>], iteration_bounds = array<i64: 1>, scalar_prefetch = 0 : i64, scratch_operands = 0 : i64, tpu.core_type = #tpu.core_type<tc>, window_params = [{transform_indices = @transform_0, window_bounds = array<i64: 8, 32>}, {transform_indices = @transform_1, window_bounds = array<i64: 8, 1>}, {transform_indices = @transform_2, window_bounds = array<i64: 1, 8>}]} {
    %c0 = arith.constant 0 : index
    %c0_0 = arith.constant 0 : index
    %0 = vector.load %arg1[%c0, %c0_0] : memref<8x32xf32, #tpu.memory_space<vmem>>, vector<8x32xf32>
    %c0_1 = arith.constant 0 : index
    %c0_2 = arith.constant 0 : index
    %1 = vector.load %arg2[%c0_1, %c0_2] : memref<8x1xi32, #tpu.memory_space<vmem>>, vector<8x1xi32>
    %cst = arith.constant dense<0xFF800000> : vector<8xf32>
    %2 = vector.multi_reduction <maximumf>, %0, %cst [1] : vector<8x32xf32> to vector<8xf32>
    %3 = vector.shape_cast %2 : vector<8xf32> to vector<8x1xf32>
    %4 = vector.broadcast %3 : vector<8x1xf32> to vector<8x32xf32>
    %5 = arith.subf %0, %4 : vector<8x32xf32>
    %6 = math.exp %5 : vector<8x32xf32>
    %cst_3 = arith.constant dense<0.000000e+00> : vector<8xf32>
    %7 = vector.multi_reduction <add>, %6, %cst_3 [1] : vector<8x32xf32> to vector<8xf32>
    %8 = vector.shape_cast %7 : vector<8xf32> to vector<8x1xf32>
    %9 = math.log %8 : vector<8x1xf32>
    %10 = tpu.iota {dimensions = array<i32: 1>} : vector<8x32xi32>
    %11 = vector.broadcast %1 : vector<8x1xi32> to vector<8x32xi32>
    %12 = arith.cmpi eq, %10, %11 : vector<8x32xi32>
    %cst_4 = arith.constant 0.000000e+00 : f32
    %13 = vector.broadcast %cst_4 : f32 to vector<8x32xf32>
    %14 = arith.select %12, %0, %13 : vector<8x32xi1>, vector<8x32xf32>
    %cst_5 = arith.constant dense<0.000000e+00> : vector<8xf32>
    %15 = vector.multi_reduction <add>, %14, %cst_5 [1] : vector<8x32xf32> to vector<8xf32>
    %16 = vector.shape_cast %15 : vector<8xf32> to vector<8x1xf32>
    %cst_6 = arith.constant dense<0.000000e+00> : vector<8xf32>
    %17 = vector.multi_reduction <add>, %0, %cst_6 [1] : vector<8x32xf32> to vector<8xf32>
    %18 = vector.shape_cast %17 : vector<8xf32> to vector<8x1xf32>
    %cst_7 = arith.constant 3.125000e-02 : f32
    %19 = vector.broadcast %cst_7 : f32 to vector<8x1xf32>
    %20 = arith.mulf %18, %19 : vector<8x1xf32>
    %21 = arith.addf %3, %9 : vector<8x1xf32>
    %cst_8 = arith.constant 0.899999976 : f32
    %22 = vector.broadcast %cst_8 : f32 to vector<8x1xf32>
    %23 = arith.mulf %22, %16 : vector<8x1xf32>
    %cst_9 = arith.constant 1.000000e-01 : f32
    %24 = vector.broadcast %cst_9 : f32 to vector<8x1xf32>
    %25 = arith.mulf %24, %20 : vector<8x1xf32>
    %26 = arith.addf %23, %25 : vector<8x1xf32>
    %27 = arith.subf %21, %26 : vector<8x1xf32>
    %28 = tpu.iota {dimensions = array<i32: 0>} : vector<8x8xi32>
    %29 = tpu.iota {dimensions = array<i32: 1>} : vector<8x8xi32>
    %30 = arith.cmpi eq, %28, %29 : vector<8x8xi32>
    %cst_10 = arith.constant 0.000000e+00 : f32
    %31 = vector.shape_cast %27 : vector<8x1xf32> to vector<8x1xf32>
    %32 = vector.broadcast %31 : vector<8x1xf32> to vector<8x8xf32>
    %33 = vector.broadcast %cst_10 : f32 to vector<8x8xf32>
    %34 = arith.select %30, %32, %33 : vector<8x8xi1>, vector<8x8xf32>
    %cst_11 = arith.constant dense<0.000000e+00> : vector<8xf32>
    %35 = vector.multi_reduction <add>, %34, %cst_11 [0] : vector<8x8xf32> to vector<8xf32>
    %36 = vector.shape_cast %35 : vector<8xf32> to vector<1x8xf32>
    %c0_12 = arith.constant 0 : index
    %c0_13 = arith.constant 0 : index
    %37 = vector.load %arg3[%c0_12, %c0_13] : memref<1x8xf32, #tpu.memory_space<vmem>>, vector<1x8xf32>
    tpu.vector_store %arg3[%c0_12, %c0_13], %36 {strides = array<i32>} : memref<1x8xf32, #tpu.memory_space<vmem>>, vector<1x8xf32>,
    return
  }
  func.func @transform_0(%arg0: i32) -> (i32, i32) {
    %c0_i32 = arith.constant 0 : i32
    %c0_i32_0 = arith.constant 0 : i32
    return %arg0, %c0_i32 : i32, i32
  }
  func.func @transform_1(%arg0: i32) -> (i32, i32) {
    %c0_i32 = arith.constant 0 : i32
    %c0_i32_0 = arith.constant 0 : i32
    return %arg0, %c0_i32 : i32, i32
  }
  func.func @transform_2(%arg0: i32) -> (i32, i32) {
    %c0_i32 = arith.constant 0 : i32
    %c0_i32_0 = arith.constant 0 : i32
    return %c0_i32, %arg0 : i32, i32
  }
}

</mosaic_0001>

<bundles_post_ra>
// kernel: tpu_custom_call.1
= control target key start
LH: loop header
LB: loop body
LE: loop exit
PB: predicated region body
PF: predicated region fallthrough
CT: control target
= control target key end

     0   :  { %vm14_vm0 = vcmask 261120   ;;  %s132_s0 = inlined_call_operand.vmem [shape: f32[8,32], index: 0, kind: input, shape index: {}]   ;;  %s133_s1 = inlined_call_operand.vmem [shape: s32[8,1], index: 1, kind: input, shape index: {}]   ;;  %s134_s2 = inlined_call_operand.hbm [shape: f32[1,8], index: 2, kind: output, shape index: {}]  }
   0x1   :  { %v12_v0 = vld [vmem:[%s132_s0] sm:$0xff] }
   0x2   :  { %7 = vsyncpa [#allocation3], 0  ;;  %v15_v1 = vsel %vm14_vm0, %v12_v0, -inf  ;;  %v102_v2 = vmov 0   ;;  %v13_v3 = vld [vmem:[%s133_s1] sm:$0xff]  ;;  %v26_v7 = vlaneseq  ;;  %v36_v12 = vsel %vm14_vm0, %v12_v0, 0.0 }
   0x3   :  { %75 = vset.pattern.permute.xlu0 %v102_v2  ;;  %vm49_vm3 = vcmask 64512   ;;  %s103_s0 = smov [#allocation2]   ;;  %vm57_vm4 = vcmask 57344  }
   0x4   :  { %16 = vmax.xlane.f32.xlu0 %v15_v1  ;;  %v27_v8 = vand.u32 127, %v26_v7  ;;  %v46_v22 = vshrl.u32 %v26_v7, 7  ;;  %s65_s1 = sshll.u32 %s103_s0, 4  ;;  %s66_s1 = int_to_ptr.vmem [resolvable:$true] %s65_s1 }
   0x5   :  { %s80_s13 = scalar_lea.vmem %s66_s1, 16  ;;  %s84_s14 = scalar_lea.vmem %s66_s1, 32 }
   0x6   :  { %vm47_vm2 = vcmp.eq.s32.totalorder %v46_v22, %v27_v8  ;;  %p81_p0 = scmp.ne.s32.totalorder %s66_s1, %s80_s13  ;;  %p85_p1 = scmp.lt.s32.totalorder %s66_s1, %s66_s1 }
   0x7   :  { %p86_p2 = scmp.lt.s32.totalorder %s84_s14, %s80_s13 }
   0x9   :  { %p87_p3 = por %p86_p2, %p85_p1 }
   0xb   :  { %p88_p4 = pnand %p87_p3, %p81_p0 }
  0x1a   :  { %29 = vperm.xlu0 %75, %v13_v3  }
  0x8d   :  { %v17_v4 = vpop.xlane.xlu0 %16 }
  0x8e   :  { %v18_v5 = vsub.f32 %v12_v0, %v17_v4 }
  0x90   :  { %v19_v6 = vmul.f32 1.442695, %v18_v5 }
  0x92   :  { %76 = vpow2.f32 %v19_v6 }
  0x95   :  { %v30_v9 = vpop.permute.xlu0 %29 }
  0x96   :  { %vm31_vm1 = vcmp.eq.s32.totalorder %v27_v8, %v30_v9 }
  0x97   :  { %v32_v13 = vsel %vm31_vm1, %v12_v0, 0.0 }
  0x98   :  { %v33_v14 = vsel %vm14_vm0, %v32_v13, 0.0 }
  0x9f   :  { %v77_v10 = vpop.eup %76 }
  0xa0   :  { %v21_v11 = vsel %vm14_vm0, %v77_v10, 0.0 }
  0xa1   :  { %22 = vadd.xlane.f32.xlu1 %v21_v11 }
  0xa5   :  { %37 = vadd.xlane.f32.xlu1 %v36_v12 }
  0xa9   :  { %34 = vadd.xlane.f32.xlu1 %v33_v14 }
 0x12a   :  { %v23_v15 = vpop.xlane.xlu1 %22 }
 0x12b   :  { %78 = vlog2.f32 %v23_v15 }
 0x12e   :  { %v38_v16 = vpop.xlane.xlu1 %37 }
 0x12f   :  { %v39_v17 = vmul.f32 0.03125, %v38_v16 }
 0x131   :  { %v42_v19 = vmul.f32 0.1, %v39_v17 }
 0x132   :  { %v35_v18 = vpop.xlane.xlu1 %34 }
 0x133   :  { %v41_v20 = vmul.f32 0.9, %v35_v18 }
 0x135   :  { %v43_v25 = vadd.f32 %v42_v19, %v41_v20 }
 0x138   :  { %v79_v21 = vpop.eup %78 }
 0x139   :  { %v25_v23 = vmul.f32 0.6931472, %v79_v21 }
 0x13b   :  { %v40_v24 = vadd.f32 %v25_v23, %v17_v4 }
 0x13d   :  { %v44_v26 = vsub.f32 %v40_v24, %v43_v25 }
 0x13f   :  { %v48_v27 = vsel %vm47_vm2, %v44_v26, 0.0 }
 0x140   :  { %v50_v28 = vsel %vm49_vm3, %v48_v27, 0.0 }
 0x141   :  { %v51_v29 = vrot.slane %v50_v28, 4 }
 0x143   :  { %v52_v30 = vadd.f32 %v51_v29, %v50_v28 }
 0x145   :  { %v53_v31 = vrot.slane %v52_v30, 2 }
 0x147   :  { %v54_v32 = vadd.f32 %v53_v31, %v52_v30 }
 0x149   :  { %v55_v33 = vrot.slane %v54_v32, 1 }
 0x14b   :  { %v56_v34 = vadd.f32 %v55_v33, %v54_v32 }
 0x14d   :  { %58 = vst.msk [vmem:[#allocation2] sm:$0x1] %vm57_vm4, %v56_v34 }
 0x14e   :  { %91 = shalt.err (!%p88_p4)
}
 0x14f   :  { %68 = dma.vmem_to_hbm [thread:$0]  %s66_s1, 16, %s134_s2, [#allocation3]  }
 0x150   :  { %100 = dma.done.wait [#allocation3], 16  }
 0x151   :  { %101 = vsyncadd [#allocation3], 4294967280 }
 0x152   :  { %72 = vsyncpa [#allocation3], 1 }

</bundles_post_ra>
